<compile_context>
chip_gen: v7x
topology: tpu7x:2x2x1
jax: 0.10.0
libtpu: 0.0.40
codegen_flags: <defaults>
</compile_context>

<pallas_src>
import jax
import jax.numpy as jnp
from jax.experimental import pallas as pl
from jax.experimental.pallas import tpu as pltpu


def _dyalge_kernel(alpha_ref, x_ref, w_ref, b_ref, o_ref):
    # alpha_ref: (1,) in SMEM; x_ref/o_ref: (Nb, C, HW) in VMEM; w/b: (1, C, 1).
    alpha = alpha_ref[0].astype(jnp.float32)
    x = x_ref[...].astype(jnp.float32)
    ax = x * alpha
    y = ax * jax.lax.rsqrt(1.0 + ax * ax)      # x / sqrt(1 + x^2), rsqrt on EUP
    w = w_ref[...].astype(jnp.float32)         # (1, C, 1) broadcasts over (Nb, C, HW)
    b = b_ref[...].astype(jnp.float32)
    o_ref[...] = (y * w + b).astype(o_ref.dtype)


def dyalge_pallas(x: jax.Array, alpha: jax.Array, weight: jax.Array,
                  bias: jax.Array, *, block_budget_bytes: int = 2 * 1024 * 1024
                  ) -> jax.Array:
    """x: (N, C, H, W); alpha: (1,); weight, bias: (1, C, 1, 1)."""
    N, C, H, W = x.shape
    HW = H * W
    assert alpha.shape == (1,)
    assert weight.shape == (1, C, 1, 1) and bias.shape == (1, C, 1, 1)

    # Lane-dense layout: last dim H*W maps to the 128-lane axis.
    x3 = x.reshape(N, C, HW)
    w3 = weight.reshape(1, C, 1)
    b3 = bias.reshape(1, C, 1)

    itemsize = x.dtype.itemsize
    sample_bytes = C * HW * itemsize
    # Largest sample count per block within budget that divides N evenly
    # (full trailing dims (C, HW) keep the (8,128) block constraint trivially
    # satisfied; partial blocks are avoided entirely).
    nb = max(1, min(N, block_budget_bytes // max(1, sample_bytes)))
    while N % nb:
        nb -= 1
    grid = (N // nb,)
    # TODO(synk): for very large C*H*W samples (esp. v7x's 64 MiB VMEM), add a
    # second "parallel" grid axis tiling H*W in multiples of 128.

    block_bytes = nb * sample_bytes
    # double-buffered in + out blocks + f32 compute copies + params + slack
    vmem_limit = int(min(96 * 1024 * 1024,
                         max(8 * 1024 * 1024, 8 * block_bytes + (1 << 20))))

    cost = pl.CostEstimate(
        flops=6 * N * C * HW,
        transcendentals=N * C * HW,
        bytes_accessed=2 * N * C * HW * itemsize + 2 * C * itemsize,
    )

    out3 = pl.pallas_call(
        _dyalge_kernel,
        out_shape=jax.ShapeDtypeStruct((N, C, HW), x.dtype),
        grid_spec=pltpu.PrefetchScalarGridSpec(
            num_scalar_prefetch=0,
            grid=grid,
            in_specs=[
                # scalar alpha, untiled, in SMEM
                pl.BlockSpec(memory_space=pltpu.MemorySpace.SMEM),
                # nb samples per grid step, lane-dense last dim
                pl.BlockSpec((nb, C, HW), lambda n: (n, 0, 0)),
                # per-channel affine params, same (whole) block every step
                pl.BlockSpec((1, C, 1), lambda n: (0, 0, 0)),
                pl.BlockSpec((1, C, 1), lambda n: (0, 0, 0)),
            ],
            out_specs=pl.BlockSpec((nb, C, HW), lambda n: (n, 0, 0)),
        ),
        compiler_params=pltpu.CompilerParams(
            dimension_semantics=("parallel",),
            vmem_limit_bytes=vmem_limit,
        ),
        cost_estimate=cost,
    )(alpha, x3, w3, b3)

    return out3.reshape(N, C, H, W)


def dyalge_ref(x, alpha, weight, bias):
    xf = x.astype(jnp.float32)
    ax = alpha[0] * xf
    y = ax / jnp.sqrt(1.0 + ax * ax)
    return (y * weight.astype(jnp.float32) + bias.astype(jnp.float32)).astype(x.dtype)


if __name__ == "__main__":
    key = jax.random.PRNGKey(0)
    kx, kw, kb = jax.random.split(key, 3)

    N, C, H, W = 2, 4, 16, 16
    x = jax.random.normal(kx, (N, C, H, W), dtype=jnp.float32)

    # Parameters: alpha init = 0.5 (as in the module); perturb weight/bias so
    # the per-channel broadcast is actually exercised (deterministic from key).
    alpha = jnp.full((1,), 0.5, dtype=jnp.float32)
    weight = (jnp.ones((1, C, 1, 1), jnp.float32)
              + 0.1 * jax.random.normal(kw, (1, C, 1, 1), dtype=jnp.float32))
    bias = 0.1 * jax.random.normal(kb, (1, C, 1, 1), dtype=jnp.float32)

    out = jax.block_until_ready(dyalge_pallas(x, alpha, weight, bias))
    ref = dyalge_ref(x, alpha, weight, bias)

    assert out.shape == (N, C, H, W)
    assert jnp.allclose(out, ref, atol=1e-5, rtol=1e-5), "mismatch vs reference"

    print("KERNEL_OK")
</pallas_src>

<mosaic_0001>
module attributes {stable_mosaic.version = 11 : i64} {
  func.func @_dyalge_kernel(%arg0: i32, %arg1: memref<1xf32, #tpu.memory_space<smem>>, %arg2: memref<2x4x256xf32, #tpu.memory_space<vmem>>, %arg3: memref<1x4x1xf32, #tpu.memory_space<vmem>>, %arg4: memref<1x4x1xf32, #tpu.memory_space<vmem>>, %arg5: memref<2x4x256xf32, #tpu.memory_space<vmem>>) attributes {dimension_semantics = [#tpu.dimension_semantics<parallel>], iteration_bounds = array<i64: 1>, scalar_prefetch = 0 : i64, scratch_operands = 0 : i64, tpu.core_type = #tpu.core_type<tc>, window_params = [{transform_indices = @transform_0, window_bounds = array<i64: 1>}, {transform_indices = @transform_1, window_bounds = array<i64: 2, 4, 256>}, {pipeline_mode = #tpu.pipeline_mode<synchronous>, transform_indices = @transform_2, window_bounds = array<i64: 1, 4, 1>}, {pipeline_mode = #tpu.pipeline_mode<synchronous>, transform_indices = @transform_3, window_bounds = array<i64: 1, 4, 1>}, {transform_indices = @transform_4, window_bounds = array<i64: 2, 4, 256>}]} {
    %c0 = arith.constant 0 : index
    %0 = memref.load %arg1[%c0] : memref<1xf32, #tpu.memory_space<smem>>
    %c0_0 = arith.constant 0 : index
    %c0_1 = arith.constant 0 : index
    %c0_2 = arith.constant 0 : index
    %1 = vector.load %arg2[%c0_0, %c0_1, %c0_2] : memref<2x4x256xf32, #tpu.memory_space<vmem>>, vector<2x4x256xf32>
    %2 = vector.broadcast %0 : f32 to vector<2x4x256xf32>
    %3 = arith.mulf %1, %2 : vector<2x4x256xf32>
    %4 = arith.mulf %3, %3 : vector<2x4x256xf32>
    %cst = arith.constant 1.000000e+00 : f32
    %5 = vector.broadcast %cst : f32 to vector<2x4x256xf32>
    %6 = arith.addf %5, %4 : vector<2x4x256xf32>
    %7 = math.rsqrt %6 : vector<2x4x256xf32>
    %8 = arith.mulf %3, %7 : vector<2x4x256xf32>
    %c0_3 = arith.constant 0 : index
    %c0_4 = arith.constant 0 : index
    %c0_5 = arith.constant 0 : index
    %9 = vector.load %arg3[%c0_3, %c0_4, %c0_5] : memref<1x4x1xf32, #tpu.memory_space<vmem>>, vector<1x4x1xf32>
    %c0_6 = arith.constant 0 : index
    %c0_7 = arith.constant 0 : index
    %c0_8 = arith.constant 0 : index
    %10 = vector.load %arg4[%c0_6, %c0_7, %c0_8] : memref<1x4x1xf32, #tpu.memory_space<vmem>>, vector<1x4x1xf32>
    %11 = vector.broadcast %9 : vector<1x4x1xf32> to vector<2x4x256xf32>
    %12 = arith.mulf %8, %11 : vector<2x4x256xf32>
    %13 = vector.broadcast %10 : vector<1x4x1xf32> to vector<2x4x256xf32>
    %14 = arith.addf %12, %13 : vector<2x4x256xf32>
    %c0_9 = arith.constant 0 : index
    %c0_10 = arith.constant 0 : index
    %c0_11 = arith.constant 0 : index
    %15 = vector.load %arg5[%c0_9, %c0_10, %c0_11] : memref<2x4x256xf32, #tpu.memory_space<vmem>>, vector<2x4x256xf32>
    tpu.vector_store %arg5[%c0_9, %c0_10, %c0_11], %14 {strides = array<i32>} : memref<2x4x256xf32, #tpu.memory_space<vmem>>, vector<2x4x256xf32>,
    return
  }
  func.func @transform_0(%arg0: i32) -> i32 {
    %c0_i32 = arith.constant 0 : i32
    %c0_i32_0 = arith.constant 0 : i32
    return %c0_i32 : i32
  }
  func.func @transform_1(%arg0: i32) -> (i32, i32, i32) {
    %c0_i32 = arith.constant 0 : i32
    %c0_i32_0 = arith.constant 0 : i32
    %c0_i32_1 = arith.constant 0 : i32
    return %arg0, %c0_i32, %c0_i32_0 : i32, i32, i32
  }
  func.func @transform_2(%arg0: i32) -> (i32, i32, i32) {
    %c0_i32 = arith.constant 0 : i32
    %c0_i32_0 = arith.constant 0 : i32
    %c0_i32_1 = arith.constant 0 : i32
    %c0_i32_2 = arith.constant 0 : i32
    return %c0_i32, %c0_i32_0, %c0_i32_1 : i32, i32, i32
  }
  func.func @transform_3(%arg0: i32) -> (i32, i32, i32) {
    %c0_i32 = arith.constant 0 : i32
    %c0_i32_0 = arith.constant 0 : i32
    %c0_i32_1 = arith.constant 0 : i32
    %c0_i32_2 = arith.constant 0 : i32
    return %c0_i32, %c0_i32_0, %c0_i32_1 : i32, i32, i32
  }
  func.func @transform_4(%arg0: i32) -> (i32, i32, i32) {
    %c0_i32 = arith.constant 0 : i32
    %c0_i32_0 = arith.constant 0 : i32
    %c0_i32_1 = arith.constant 0 : i32
    return %arg0, %c0_i32, %c0_i32_0 : i32, i32, i32
  }
}

</mosaic_0001>

<bundles_post_ra>
// kernel: tpu_custom_call.1
= control target key start
LH: loop header
LB: loop body
LE: loop exit
PB: predicated region body
PF: predicated region fallthrough
CT: control target
= control target key end

     0   :  { %10 = vsyncpa [#allocation4], 0  ;;  %s225_s0 = inlined_call_operand.<no memory space> [shape: f32[1], index: 0, kind: input, shape index: {}]   ;;  %s226_s1 = inlined_call_operand.hbm [shape: f32[2,4,256], index: 1, kind: input, shape index: {}]   ;;  %s227_s2 = inlined_call_operand.vmem [shape: f32[1,4,1], index: 2, kind: input, shape index: {}]   ;;  %s228_s3 = inlined_call_operand.vmem [shape: f32[1,4,1], index: 3, kind: input, shape index: {}]   ;;  %s229_s4 = inlined_call_operand.hbm [shape: f32[2,4,256], index: 4, kind: output, shape index: {}]  }
   0x1   :  { %11 = vsyncpa [#allocation5], 0  ;;  %s155_s15 = smov [#allocation3]   ;;  %s107_s19 = scalar_lea.hbm %s226_s1, 256 }
   0x2   :  { %s19_s16 = sshll.u32 %s155_s15, 4  ;;  %p108_p0 = scmp.ne.s32.totalorder %s226_s1, %s107_s19  ;;  %s20_s16 = int_to_ptr.vmem [resolvable:$true] %s19_s16 }
   0x3   :  { %p111_p1 = scmp.lt.u32.totalorder %s107_s19, %s226_s1 }
   0x5   :  { %p113_p2 = pnand %p111_p1, %p108_p0 }
   0x7   :  { %116 = shalt.err (!%p113_p2)
}
   0x8   :  { %s117_s24 = scalar_lea.vmem %s20_s16, 256  ;;  %p122_p4 = scmp.lt.s32.totalorder %s20_s16, %s20_s16 }
   0x9   :  { %p118_p3 = scmp.ne.s32.totalorder %s20_s16, %s117_s24  ;;  %p123_p5 = scmp.lt.s32.totalorder %s117_s24, %s117_s24 }
   0xb   :  { %p124_p6 = por %p123_p5, %p122_p4 }
   0xd   :  { %p125_p7 = pnand %p124_p6, %p118_p3 }
   0xf   :  { %128 = shalt.err (!%p125_p7)
}
  0x10   :  { %s156_s25 = smov 128   ;;  %s157_s26 = smov 8  }
  0x11   :  { %25 = dma.hbm_to_vmem [thread:$0]  %s226_s1, 256, %s20_s16, [#allocation4], %s156_s25, %s156_s25, %s157_s26  }
  0x12   :  { %151 = dma.done.wait [#allocation4], 256  }
  0x13   :  { %152 = vsyncadd [#allocation4], 4294967040  ;;  %v158_v0 = vmov 0   ;;  %v47_v1 = vld [vmem:[%s227_s2] sm:$0xf]  ;;  %v36_v3 = vstv %s225_s0  ;;  %v35_v5 = vld [vmem:[#allocation3 + $0x8] sm:$0xff]  ;;  %v56_v14 = vlaneseq }
  0x14   :  { %102 = vset.pattern.permute.xlu0 %v158_v0  ;;  %v48_v2 = vld [vmem:[%s228_s3] sm:$0xf]  ;;  %v38_v7 = vmul.f32 %v36_v3, %v35_v5  ;;  %v159_v12 = vmov 839922192   ;;  %s160_s0 = smov [#allocation6]  }
  0x15   :  { %51 = vperm.xlu0 %102, %v47_v1   ;;  %v34_v4 = vld [vmem:[#allocation3] sm:$0xff]  ;;  %v54_v13 = vunpack.c.l.s4 %v159_v12  ;;  %v57_v16 = vshrl.u32 %v56_v14, 7  ;;  %s84_s1 = sshll.u32 %s160_s0, 4  ;;  %s85_s1 = int_to_ptr.vmem [resolvable:$true] %s84_s1 }
  0x16   :  { %v37_v6 = vmul.f32 %v36_v3, %v34_v4  ;;  %v40_v9 = vmul.f32 %v38_v7, %v38_v7  ;;  %s129_s2 = scalar_lea.vmem %s85_s1, 256  ;;  %p134_p9 = scmp.lt.s32.totalorder %s85_s1, %s85_s1 }
  0x17   :  { %v55_v15 = vunpack.c.0.s8 %v54_v13  ;;  %p130_p8 = scmp.ne.s32.totalorder %s85_s1, %s129_s2  ;;  %p135_p10 = scmp.lt.s32.totalorder %s129_s2, %s129_s2 }
  0x18   :  { %v39_v8 = vmul.f32 %v37_v6, %v37_v6  ;;  %v42_v11 = vadd.f32 1.0, %v40_v9 }
  0x19   :  { %65 = vperm.xlu0 %102, %v48_v2   ;;  %v58_v18 = vsub.s32 %v55_v15, %v57_v16  ;;  %p136_p11 = por %p135_p10, %p134_p9 }
  0x1a   :  { %v41_v10 = vadd.f32 1.0, %v39_v8 }
  0x1b   :  { %p137_p12 = pnand %p136_p11, %p130_p8 }
  0x1c   :  { %103 = vrsqrt.f32 %v41_v10 }
  0x1d   :  { %105 = vrsqrt.f32 %v42_v11 }
  0x26   :  { %v104_v17 = vpop.eup %103 }
  0x27   :  { %v106_v19 = vpop.eup %105  ;;  %v45_v21 = vmul.f32 %v104_v17, %v37_v6 }
  0x28   :  { %v46_v22 = vmul.f32 %v106_v19, %v38_v7 }
  0x94   :  { %v52_v20 = vpop.permute.xlu0 %51 }
  0x95   :  { %v59_v23 = vrot.slane %v52_v20, %v58_v18 }
  0x97   :  { %v61_v25 = vmul.f32 %v59_v23, %v45_v21  ;;  %v62_v26 = vmul.f32 %v59_v23, %v46_v22 }
  0x98   :  { %v66_v24 = vpop.permute.xlu0 %65 }
  0x99   :  { %v73_v27 = vrot.slane %v66_v24, %v58_v18 }
  0x9b   :  { %v75_v28 = vadd.f32 %v73_v27, %v61_v25  ;;  %v76_v29 = vadd.f32 %v73_v27, %v62_v26 }
  0x9d   :  { %77 = vst [vmem:[#allocation6] sm:$0xff] %v75_v28  ;;  %78 = vst [vmem:[#allocation6 + $0x8] sm:$0xff] %v76_v29 }
  0x9e   :  { %140 = shalt.err (!%p137_p12)
}
  0x9f   :  { %s141_s10 = scalar_lea.hbm %s229_s4, 256 }
  0xa0   :  { %p142_p13 = scmp.ne.s32.totalorder %s229_s4, %s141_s10  ;;  %p145_p0 = scmp.lt.u32.totalorder %s141_s10, %s229_s4 }
  0xa2   :  { %p147_p1 = pnand %p145_p0, %p142_p13 }
  0xa4   :  { %150 = shalt.err (!%p147_p1)
}
  0xa5   :  { %90 = dma.vmem_to_hbm [thread:$0]  %s85_s1, 256, %s229_s4, [#allocation5], %s156_s25, %s156_s25, %s157_s26  }
  0xa6   :  { %153 = dma.done.wait [#allocation5], 256  }
  0xa7   :  { %154 = vsyncadd [#allocation5], 4294967040 }
  0xa8   :  { %94 = vsyncpa [#allocation4], 1 }
  0xa9   :  { %95 = vsyncpa [#allocation5], 1 }

</bundles_post_ra>
